<compile_context>
chip_gen: v7x
topology: tpu7x:2x2x1
jax: 0.10.0
libtpu: 0.0.40
codegen_flags: <defaults>
</compile_context>

<pallas_src>
import functools

import numpy as np
import jax
import jax.numpy as jnp
from jax import lax
from jax.experimental import pallas as pl
from jax.experimental.pallas import tpu as pltpu

K = 7          # Conv3d kernel size (7, 7, 7)
PAD = 3        # spatial padding
CO_CHUNK = 4   # output channels accumulated together per tap loop (4 x (16,256) = 16 vregs)
MID_OFF = 8    # 8-aligned row offset of the data region inside the mid scratch


@functools.lru_cache(maxsize=None)
def _roll_gather_sign() -> int:
    """Resolve the direction convention of pltpu.roll on this backend.

    Returns sgn such that
        pltpu.roll(x, (sgn*s) % n, axis=-1)[..., i] == x[..., (i + s) % n].
    Resolved once with a tiny probe kernel (call this eagerly before jit-tracing the
    wrapper; the result is cached).
    """
    def probe(x_ref, o_ref):
        o_ref[...] = pltpu.roll(x_ref[...], shift=1, axis=1)

    with jax.ensure_compile_time_eval():
        x = jnp.broadcast_to(jnp.arange(128, dtype=jnp.float32), (8, 128))
        y = pl.pallas_call(
            probe, out_shape=jax.ShapeDtypeStruct((8, 128), jnp.float32))(x)
        row = np.asarray(y)[0]
    if row[1] == 0.0:     # numpy semantics: out[i] = x[(i - shift) % n]
        return -1
    if row[1] == 2.0:     # opposite:        out[i] = x[(i + shift) % n]
        return 1
    raise RuntimeError(f"Unexpected pltpu.roll semantics (probe row head: {row[:4]})")


def _make_mask_table(d, h, w):
    """(K*K, d, h*w) float32 validity mask for every in-plane tap (kh, kw).

    mask[kh*K+kw, :, y*w + x] == 1 iff (y + kh - PAD, x + kw - PAD) lies inside the
    unpadded (h, w) plane.  Pre-broadcast over the d sublanes so the in-kernel read is
    a plain contiguous (d, h*w) load.
    """
    ys = np.arange(h)[:, None]
    xs = np.arange(w)[None, :]
    rows = []
    for kh in range(K):
        for kw in range(K):
            dy, dx = kh - PAD, kw - PAD
            ok = (ys + dy >= 0) & (ys + dy < h) & (xs + dx >= 0) & (xs + dx < w)
            rows.append(ok.astype(np.float32).reshape(h * w))
    tab = np.stack(rows, axis=0)                                    # (49, h*w)
    return np.ascontiguousarray(np.broadcast_to(tab[:, None, :], (K * K, d, h * w)))


def _make_fused_kernel(cin, cmid, cout, d, h, w, roll_sign):
    hw = h * w
    k3 = K * K * K
    in_pitch = d + 2 * PAD                     # depth pitch of the wrapper-padded input
    mid_pitch = (-(-d // 8) * 8) + 8           # depth pitch of the mid scratch (8-aligned)
    mid_rows = -(-((cmid - 1) * mid_pitch + MID_OFF + d + PAD) // 8) * 8

    def lane_shift(x, dy, dx):
        """x is (d, hw) with lanes flattened row-major as (y, x).  Returns
        out[:, y*w + x] = x[:, (y+dy)*w + (x+dx)]; lanes that wrap are garbage and are
        zeroed by the tap mask."""
        s = dy * w + dx
        if s == 0:
            return x
        return pltpu.roll(x, shift=(roll_sign * s) % hw, axis=1)

    def conv_prelu_chunk(read_slab, w_ref, b_ref, a_ref, mask_ref, n_ci, co_list):
        """Sum-of-taps 7^3 conv + bias + PReLU for the output channels in `co_list`.

        read_slab(ci, kd) -> (d, hw) depth-shifted, lane-flattened input slab.
        Accumulators are fori_loop carries; each tap's lane roll + boundary mask is
        computed once and reused across all output channels of the chunk."""
        def body(t, accs):
            ci = t // K
            kd = t - ci * K
            slab = read_slab(ci, kd)                              # (d, hw)
            accs = list(accs)
            for kh in range(K):
                for kw in range(K):
                    khw = kh * K + kw
                    dy, dx = kh - PAD, kw - PAD
                    if dy == 0 and dx == 0:
                        contrib = slab                            # centre tap: no shift/mask
                    else:
                        contrib = lane_shift(slab, dy, dx) * mask_ref[khw]
                    wbase = t * (K * K) + khw                     # == ((ci*K+kd)*K+kh)*K+kw
                    for i, co in enumerate(co_list):
                        accs[i] = accs[i] + contrib * w_ref[co * n_ci * k3 + wbase]
            return tuple(accs)

        init = tuple(jnp.zeros((d, hw), jnp.float32) for _ in co_list)
        accs = lax.fori_loop(0, n_ci * K, body, init)

        outs = []
        for i, co in enumerate(co_list):
            y = accs[i] + b_ref[co]
            outs.append(jnp.maximum(y, 0.0) + a_ref[0] * jnp.minimum(y, 0.0))  # PReLU
        return outs

    def kernel(w1_ref, b1_ref, a1_ref, w2_ref, b2_ref, a2_ref,
               mask_ref, x_ref, o_ref, mid_ref):
        # -------- layer 1: Cin -> Cmid, PReLU'd result kept in the VMEM scratch -------
        # Zero every grid step: the depth-halo rows must be zero, the scratch is
        # per-core, and the grid axis is "parallel" (so this must not be pid-gated).
        mid_ref[...] = jnp.zeros((mid_rows, hw), jnp.float32)

        def read_x(ci, kd):
            return x_ref[0, pl.ds(ci * in_pitch + kd, d), :]

        for c0 in range(0, cmid, CO_CHUNK):
            co_list = list(range(c0, min(c0 + CO_CHUNK, cmid)))
            outs = conv_prelu_chunk(read_x, w1_ref, b1_ref, a1_ref, mask_ref,
                                    cin, co_list)
            for i, co in enumerate(co_list):
                # 8-sublane-aligned store of channel co's D data rows.
                mid_ref[pl.ds(co * mid_pitch + MID_OFF, d), :] = outs[i]

        # TODO(synk): nn.Dropout(p=dropout) with p > 0 would need the pltpu PRNG and a
        # training flag; the module default p=0.0 is the identity, so it is omitted.

        # -------- layer 2: Cmid -> Cout, reads the scratch, writes the output ---------
        def read_mid(ci, kd):
            return mid_ref[pl.ds(ci * mid_pitch + (MID_OFF - PAD) + kd, d), :]

        for c0 in range(0, cout, CO_CHUNK):
            co_list = list(range(c0, min(c0 + CO_CHUNK, cout)))
            outs = conv_prelu_chunk(read_mid, w2_ref, b2_ref, a2_ref, mask_ref,
                                    cmid, co_list)
            for i, co in enumerate(co_list):
                o_ref[0, co] = outs[i]

    return kernel, mid_rows


def patch_mapping(x, w1, b1, a1, w2, b2, a2):
    """Forward pass of PatchMapping: conv7^3+PReLU -> dropout(p=0) -> conv7^3+PReLU."""
    n, cin, d, h, w = x.shape
    cmid, cin_w, k, _, _ = w1.shape
    cout = w2.shape[0]
    assert cin_w == cin and k == K and w2.shape == (cout, cmid, K, K, K)
    hw = h * w
    in_pitch = d + 2 * PAD

    # Depth-pad and lane-flatten the input: rows = (Cin, D+6), lanes = H*W (multiple of
    # 128 -> lane-dense HBM->VMEM DMA and lane-dense in-kernel slabs).
    xp = jnp.pad(x.astype(jnp.float32),
                 ((0, 0), (0, 0), (PAD, PAD), (0, 0), (0, 0)))
    xp = xp.reshape(n, cin * in_pitch, hw)

    w1f = w1.astype(jnp.float32).reshape(-1)       # scalar weight tables -> SMEM
    w2f = w2.astype(jnp.float32).reshape(-1)
    b1f = b1.astype(jnp.float32).reshape(cmid)
    b2f = b2.astype(jnp.float32).reshape(cout)
    a1f = jnp.asarray(a1, jnp.float32).reshape(1)
    a2f = jnp.asarray(a2, jnp.float32).reshape(1)
    mask_tab = jnp.asarray(_make_mask_table(d, h, w))              # (49, d, h*w)

    kernel, mid_rows = _make_fused_kernel(cin, cmid, cout, d, h, w,
                                          _roll_gather_sign())

    def smem():
        return pl.BlockSpec(memory_space=pltpu.MemorySpace.SMEM)

    out = pl.pallas_call(
        kernel,
        out_shape=jax.ShapeDtypeStruct((n, cout, d, hw), jnp.float32),
        grid=(n,),
        in_specs=[
            smem(), smem(), smem(),                 # w1, b1, alpha1
            smem(), smem(), smem(),                 # w2, b2, alpha2
            # tap-boundary masks: one VMEM-resident block across the whole grid
            pl.BlockSpec((K * K, d, hw), lambda i: (0, 0, 0)),
            # padded, lane-flattened input of batch element i
            pl.BlockSpec((1, cin * in_pitch, hw), lambda i: (i, 0, 0)),
        ],
        out_specs=pl.BlockSpec((1, cout, d, hw), lambda i: (i, 0, 0, 0)),
        scratch_shapes=[pltpu.VMEM((mid_rows, hw), jnp.float32)],   # mid activation
        compiler_params=pltpu.CompilerParams(
            dimension_semantics=("parallel",)),
    )(w1f, b1f, a1f, w2f, b2f, a2f, mask_tab, xp)

    return out.reshape(n, cout, d, h, w)


def _reference(x, w1, b1, a1, w2, b2, a2):
    """Pure-JAX/XLA replica of the PyTorch forward."""
    def conv(v, wt, bs):
        y = lax.conv_general_dilated(
            v, wt, window_strides=(1, 1, 1),
            padding=((3, 3), (3, 3), (3, 3)),
            dimension_numbers=("NCDHW", "OIDHW", "NCDHW"),
            precision=lax.Precision.HIGHEST)
        return y + bs[None, :, None, None, None]

    def prelu(y, a):
        return jnp.maximum(y, 0.0) + a * jnp.minimum(y, 0.0)

    hmid = prelu(conv(x, w1, b1), a1)
    return prelu(conv(hmid, w2, b2), a2)


if __name__ == "__main__":
    key = jax.random.PRNGKey(0)
    k1, k2, k3, k4, k5 = jax.random.split(key, 5)

    batch, in_channels, out_channels = 2, 4, 8
    mid_channels = max(in_channels // 2, 1)           # = 2, as in the module
    D = H = W = 16

    patches = jax.random.normal(k1, (batch, in_channels, D, H, W), jnp.float32)
    w1 = 0.05 * jax.random.normal(k2, (mid_channels, in_channels, 7, 7, 7), jnp.float32)
    b1 = 0.1 * jax.random.normal(k3, (mid_channels,), jnp.float32)
    w2 = 0.05 * jax.random.normal(k4, (out_channels, mid_channels, 7, 7, 7), jnp.float32)
    b2 = 0.1 * jax.random.normal(k5, (out_channels,), jnp.float32)
    a1 = jnp.float32(0.25)                            # nn.PReLU() default init
    a2 = jnp.float32(0.25)

    # Resolve the pltpu.roll direction eagerly (cached) before jit-tracing the wrapper.
    _roll_gather_sign()

    out = jax.jit(patch_mapping)(patches, w1, b1, a1, w2, b2, a2)
    out = jax.block_until_ready(out)

    ref = _reference(patches, w1, b1, a1, w2, b2, a2)
    assert out.shape == (batch, out_channels, D, H, W), out.shape
    max_err = float(jnp.max(jnp.abs(out - ref)))
    assert jnp.allclose(out, ref, atol=2e-3, rtol=2e-3), max_err

    print("KERNEL_OK")
</pallas_src>

<mosaic_0001>
module attributes {stable_mosaic.version = 11 : i64} {
  func.func @probe(%arg0: memref<8x128xf32, #tpu.memory_space<vmem>>, %arg1: memref<8x128xf32, #tpu.memory_space<vmem>>) attributes {dimension_semantics = [], scalar_prefetch = 0 : i64, scratch_operands = 0 : i64, tpu.core_type = #tpu.core_type<tc>} {
    %c0 = arith.constant 0 : index
    %c0_0 = arith.constant 0 : index
    %0 = vector.load %arg0[%c0, %c0_0] : memref<8x128xf32, #tpu.memory_space<vmem>>, vector<8x128xf32>
    %c1_i32 = arith.constant 1 : i32
    %1 = tpu.dynamic_rotate %0 by %c1_i32 dim 1 : vector<8x128xf32>, i32 -> vector<8x128xf32>
    %c0_1 = arith.constant 0 : index
    %c0_2 = arith.constant 0 : index
    %2 = vector.load %arg1[%c0_1, %c0_2] : memref<8x128xf32, #tpu.memory_space<vmem>>, vector<8x128xf32>
    tpu.vector_store %arg1[%c0_1, %c0_2], %1 {strides = array<i32>} : memref<8x128xf32, #tpu.memory_space<vmem>>, vector<8x128xf32>,
    return
  }
}

</mosaic_0001>

<bundles_post_ra>
// kernel: tpu_custom_call.1
= control target key start
LH: loop header
LB: loop body
LE: loop exit
PB: predicated region body
PF: predicated region fallthrough
CT: control target
= control target key end

     0   :  { %6 = vsyncpa [#allocation3], 0  ;;  %s128_s0 = inlined_call_operand.hbm [shape: f32[8,128], index: 0, kind: input, shape index: {}]   ;;  %s129_s1 = inlined_call_operand.hbm [shape: f32[8,128], index: 1, kind: output, shape index: {}]  }
   0x1   :  { %7 = vsyncpa [#allocation4], 0  ;;  %s91_s6 = smov [#allocation2]   ;;  %s43_s10 = scalar_lea.hbm %s128_s0, 128 }
   0x2   :  { %s14_s7 = sshll.u32 %s91_s6, 4  ;;  %p44_p0 = scmp.ne.s32.totalorder %s128_s0, %s43_s10  ;;  %s15_s7 = int_to_ptr.vmem [resolvable:$true] %s14_s7 }
   0x3   :  { %p47_p1 = scmp.lt.u32.totalorder %s43_s10, %s128_s0 }
   0x5   :  { %p49_p2 = pnand %p47_p1, %p44_p0 }
   0x7   :  { %52 = shalt.err (!%p49_p2)
}
   0x8   :  { %s53_s15 = scalar_lea.vmem %s15_s7, 128  ;;  %p58_p4 = scmp.lt.s32.totalorder %s15_s7, %s15_s7 }
   0x9   :  { %p54_p3 = scmp.ne.s32.totalorder %s15_s7, %s53_s15  ;;  %p59_p5 = scmp.lt.s32.totalorder %s53_s15, %s53_s15 }
   0xb   :  { %p60_p6 = por %p59_p5, %p58_p4 }
   0xd   :  { %p61_p7 = pnand %p60_p6, %p54_p3 }
   0xf   :  { %64 = shalt.err (!%p61_p7)
}
  0x10   :  { %17 = dma.hbm_to_vmem [thread:$0]  %s128_s0, 128, %s15_s7, [#allocation3]  }
  0x11   :  { %87 = dma.done.wait [#allocation3], 128  }
  0x12   :  { %88 = vsyncadd [#allocation3], 4294967168  ;;  %v21_v0 = vld [vmem:[#allocation2] sm:$0xff]  ;;  %s92_s18 = smov 1   ;;  %s93_s19 = smov [#allocation5]  }
  0x13   :  { %22 = vrot.lane.b32.xlu0 %v21_v0, %s92_s18  ;;  %s31_s20 = sshll.u32 %s93_s19, 4  ;;  %s32_s20 = int_to_ptr.vmem [resolvable:$true] %s31_s20 }
  0x14   :  { %s65_s21 = scalar_lea.vmem %s32_s20, 128  ;;  %p70_p9 = scmp.lt.s32.totalorder %s32_s20, %s32_s20 }
  0x15   :  { %p66_p8 = scmp.ne.s32.totalorder %s32_s20, %s65_s21  ;;  %p71_p10 = scmp.lt.s32.totalorder %s65_s21, %s65_s21 }
  0x17   :  { %p72_p11 = por %p71_p10, %p70_p9 }
  0x19   :  { %p73_p12 = pnand %p72_p11, %p66_p8 }
  0x85   :  { %v23_v1 = vpop.permute.xlu0 %22 }
  0x86   :  { %24 = vst [vmem:[#allocation5] sm:$0xff] %v23_v1 }
  0x87   :  { %76 = shalt.err (!%p73_p12)
}
  0x88   :  { %s77_s0 = scalar_lea.hbm %s129_s1, 128 }
  0x89   :  { %p78_p13 = scmp.ne.s32.totalorder %s129_s1, %s77_s0  ;;  %p81_p0 = scmp.lt.u32.totalorder %s77_s0, %s129_s1 }
  0x8b   :  { %p83_p1 = pnand %p81_p0, %p78_p13 }
  0x8d   :  { %86 = shalt.err (!%p83_p1)
}
  0x8e   :  { %34 = dma.vmem_to_hbm [thread:$0]  %s32_s20, 128, %s129_s1, [#allocation4]  }
  0x8f   :  { %89 = dma.done.wait [#allocation4], 128  }
  0x90   :  { %90 = vsyncadd [#allocation4], 4294967168 }
  0x91   :  { %38 = vsyncpa [#allocation3], 1 }
  0x92   :  { %39 = vsyncpa [#allocation4], 1 }

</bundles_post_ra>
